<compile_context>
chip_gen: v7x
topology: tpu7x:2x2x1
jax: 0.10.0
libtpu: 0.0.40
codegen_flags: <defaults>
</compile_context>

<pallas_src>
import jax
import jax.numpy as jnp
from jax.experimental import pallas as pl
from jax.experimental.pallas import tpu as pltpu


_NEG_SLOPE = 0.01  # torch.nn.LeakyReLU default negative_slope


def _leaky_relu(x):
    # max-form: mathematically identical to where(x>0, x, slope*x) for 0<slope<1,
    # but lowers to mul+max (2 VPU ops) instead of cmp+select+mul (3 ops).
    return jnp.maximum(x, _NEG_SLOPE * x)


def _round_up(x, m):
    return ((x + m - 1) // m) * m


def _vmem_capacity_bytes():
    """Per-core VMEM capacity; conservative fallback if the query fails."""
    try:
        cap = getattr(pltpu.get_tpu_info(), "vmem_capacity_bytes", None)
        if cap:
            return int(cap)
    except Exception:
        pass
    return 64 * 1024 * 1024  # v7x per-TC VMEM (safe lower bound)


def fusion_kernel(main_ref, aux_ref, w1m_ref, w1a_ref, b1_ref,
                  w2_ref, b2_ref, w3_ref, b3_ref, out_ref):
    # fc1 + LeakyReLU.  The torch.cat is folded into two small dots over the
    # split weight (no concatenated copy ever hits HBM); f32 accumulation.
    m = main_ref[...].astype(jnp.bfloat16)
    a = aux_ref[...].astype(jnp.bfloat16)
    feats = (jnp.dot(m, w1m_ref[...], preferred_element_type=jnp.float32)
             + jnp.dot(a, w1a_ref[...], preferred_element_type=jnp.float32)
             + b1_ref[...])
    feats = _leaky_relu(feats)

    # fc2 + LeakyReLU + residual (elementwise math stays f32).
    med = jnp.dot(feats.astype(jnp.bfloat16), w2_ref[...],
                  preferred_element_type=jnp.float32) + b2_ref[...]
    med = _leaky_relu(med) + feats

    # fc3 + LeakyReLU; cast only at the final (lane-dense) store.
    res = jnp.dot(med.astype(jnp.bfloat16), w3_ref[...],
                  preferred_element_type=jnp.float32) + b3_ref[...]
    out_ref[...] = _leaky_relu(res).astype(out_ref.dtype)


def _pick_tile_b(B, Fm, Fa, M_p, T_p, out_itemsize, budget):
    """Largest multiple-of-16 batch tile whose working set fits `budget`."""
    # Resident weights/biases.  Counted double-buffered (worst case, in case
    # the Buffered(1) single-buffer request is unavailable).
    weight_bytes = 2 * (2 * ((Fm + Fa) * M_p + M_p * M_p + M_p * T_p)
                        + 4 * (2 * M_p + T_p))
    # TODO(synk): if weight_bytes alone ever exceeds `budget` (very large M),
    # add a weight-tiled (output-feature / K-streaming) grid axis instead of
    # bottoming out at the minimum batch tile.

    def act_bytes(tb):
        in_io = 2 * tb * (Fm + Fa) * 4            # double-buffered f32 input tiles
        out_io = 2 * tb * T_p * out_itemsize      # double-buffered output tile
        live = tb * (4 * M_p + 2 * M_p            # feats f32 + bf16 copy
                     + 4 * M_p + 2 * M_p          # med   f32 + bf16 copy
                     + 4 * T_p)                   # pre-store result f32
        return in_io + out_io + live

    tile_b = min(2048, _round_up(B, 16))
    while tile_b > 16 and weight_bytes + act_bytes(tile_b) > budget:
        tile_b = max(16, _round_up(tile_b // 2, 16))
    return max(16, _round_up(tile_b, 16))


def fusion_net(main, aux, params, *, tile_b=None, out_dtype=jnp.float32):
    """main: (B, Fm), aux: (B, Fa) -> (B, T).  Whole MLP fused in one kernel."""
    B, Fm = main.shape
    Ba, Fa = aux.shape
    assert Ba == B
    w1, b1, w2, b2, w3, b3 = params
    K, M = w1.shape
    T = w3.shape[1]
    assert K == Fm + Fa

    out_itemsize = jnp.dtype(out_dtype).itemsize
    M_p = _round_up(M, 128)
    T_p = _round_up(T, 128)

    cap = _vmem_capacity_bytes()
    budget = int(cap * 0.70)      # tile-picking working-set budget
    vmem_limit = int(cap * 0.85)  # compiler limit, ~15% headroom over budget

    if tile_b is None:
        tile_b = _pick_tile_b(B, Fm, Fa, M_p, T_p, out_itemsize, budget)
    tile_b = max(16, _round_up(min(tile_b, _round_up(B, 16)), 16))

    steps = pl.cdiv(B, tile_b)
    if steps > 1 and steps % 2 == 1:
        # v7x has two TensorCores: keep the "parallel" batch axis even so both
        # cores stay busy on the last pair of steps.
        tile_b = max(16, _round_up(pl.cdiv(B, steps + 1), 16))
        steps = pl.cdiv(B, tile_b)
        if steps % 2 == 1:
            steps += 1
    B_p = tile_b * steps
    grid = (steps,)

    # --- wrapper-side prep: split W1, zero-pad feature axes, bf16 weights. ---
    # main/aux are passed through untouched (besides optional batch zero-pad),
    # so the only HBM traffic for activations is one read + one output write.
    if B_p != B:
        main_in = jnp.pad(main, ((0, B_p - B), (0, 0)))
        aux_in = jnp.pad(aux, ((0, B_p - B), (0, 0)))
    else:
        main_in, aux_in = main, aux

    def pad_w(w, rows, cols):
        return jnp.pad(w, ((0, rows - w.shape[0]),
                           (0, cols - w.shape[1]))).astype(jnp.bfloat16)

    def pad_b(b, cols):
        b2d = jnp.reshape(b, (1, -1))
        return jnp.pad(b2d, ((0, 0), (0, cols - b2d.shape[1]))).astype(jnp.float32)

    w1m_p = pad_w(w1[:Fm], Fm, M_p)
    w1a_p = pad_w(w1[Fm:], Fa, M_p)
    b1p = pad_b(b1, M_p)
    w2p, b2p = pad_w(w2, M_p, M_p), pad_b(b2, M_p)
    w3p, b3p = pad_w(w3, M_p, T_p), pad_b(b3, T_p)

    flops = 2 * B_p * ((Fm + Fa) * M_p + M_p * M_p + M_p * T_p)
    bytes_accessed = (B_p * (Fm + Fa) * 4
                      + sum(arr.size * arr.dtype.itemsize
                            for arr in (w1m_p, w1a_p, b1p, w2p, b2p, w3p, b3p))
                      + B_p * T_p * out_itemsize)
    cost = pl.CostEstimate(flops=flops, transcendentals=0,
                           bytes_accessed=bytes_accessed)

    def build(weight_mode):
        def wspec(shape):
            return pl.BlockSpec(shape, lambda i: (0, 0),
                                pipeline_mode=weight_mode)

        in_specs = [
            pl.BlockSpec((tile_b, Fm), lambda i: (i, 0)),   # main tile
            pl.BlockSpec((tile_b, Fa), lambda i: (i, 0)),   # aux tile
            wspec((Fm, M_p)),                               # W1 (main rows)
            wspec((Fa, M_p)),                               # W1 (aux rows)
            wspec((1, M_p)),                                # b1
            wspec((M_p, M_p)),                              # W2
            wspec((1, M_p)),                                # b2
            wspec((M_p, T_p)),                              # W3
            wspec((1, T_p)),                                # b3
        ]
        out_spec = pl.BlockSpec((tile_b, T_p), lambda i: (i, 0))
        return pl.pallas_call(
            fusion_kernel,
            out_shape=jax.ShapeDtypeStruct((B_p, T_p), out_dtype),
            grid_spec=pltpu.PrefetchScalarGridSpec(
                num_scalar_prefetch=0,
                grid=grid,
                in_specs=in_specs,
                out_specs=out_spec,
            ),
            compiler_params=pltpu.CompilerParams(
                dimension_semantics=("parallel",),
                vmem_limit_bytes=vmem_limit,
            ),
            cost_estimate=cost,
        )

    args = (main_in, aux_in, w1m_p, w1a_p, b1p, w2p, b2p, w3p, b3p)
    try:
        # Grid-invariant weights: request single-buffering (pure VMEM saving).
        out = build(pl.Buffered(1))(*args)
    except Exception:
        # Fallback: default double-buffered pipeline (always lowers).
        out = build(None)(*args)

    return out[:B, :T]


def init_params(key, main_features, aux_features, medium_features,
                target_features):
    """Deterministic synthetic init matching torch.nn.Linear's default."""
    ks = jax.random.split(key, 6)
    in1 = main_features + aux_features

    def lin(kw, kb, fan_in, fan_out):
        bound = 1.0 / jnp.sqrt(fan_in)
        w = jax.random.uniform(kw, (fan_in, fan_out), jnp.float32,
                               -bound, bound)
        b = jax.random.uniform(kb, (1, fan_out), jnp.float32, -bound, bound)
        return w, b

    w1, b1 = lin(ks[0], ks[1], in1, medium_features)
    w2, b2 = lin(ks[2], ks[3], medium_features, medium_features)
    w3, b3 = lin(ks[4], ks[5], medium_features, target_features)
    return (w1, b1, w2, b2, w3, b3)


def fusion_net_ref(main, aux, params, *, matmul_dtype=jnp.float32):
    """Pure-JAX reference mirroring the PyTorch forward.

    matmul_dtype=jnp.bfloat16 mirrors the kernel's precision (bf16 MXU
    operands, f32 accumulation) for a tight comparison.
    """
    w1, b1, w2, b2, w3, b3 = params

    def mm(a, w):
        return jnp.dot(a.astype(matmul_dtype), w.astype(matmul_dtype),
                       preferred_element_type=jnp.float32)

    x = jnp.concatenate([main, aux], axis=1)
    feats = _leaky_relu(mm(x, w1) + b1)
    med = _leaky_relu(mm(feats, w2) + b2) + feats
    return _leaky_relu(mm(med, w3) + b3)


if __name__ == "__main__":
    # Small shapes consistent with the module.
    batch = 8
    main_features = 16
    aux_features = 16
    medium_features = 32
    target_features = 32

    key = jax.random.PRNGKey(0)
    k_main, k_aux, k_param = jax.random.split(key, 3)

    main = jax.random.normal(k_main, (batch, main_features), jnp.float32)
    aux = jax.random.normal(k_aux, (batch, aux_features), jnp.float32)
    params = init_params(k_param, main_features, aux_features,
                         medium_features, target_features)

    out = fusion_net(main, aux, params)
    out = jax.block_until_ready(out)
    assert out.shape == (batch, target_features)

    # Tight check against a reference with matching (bf16-matmul) precision.
    ref_bf16 = fusion_net_ref(main, aux, params, matmul_dtype=jnp.bfloat16)
    assert jnp.allclose(out, ref_bf16, atol=3e-3, rtol=3e-3)

    # Loose sanity check against the full-f32 reference.
    ref_f32 = fusion_net_ref(main, aux, params)
    assert jnp.allclose(out, ref_f32, atol=1e-1, rtol=1e-1)

    print("KERNEL_OK")
</pallas_src>

<mosaic_0001>
module attributes {stable_mosaic.version = 11 : i64} {
  func.func @fusion_kernel(%arg0: i32, %arg1: memref<16x16xf32, #tpu.memory_space<vmem>>, %arg2: memref<16x16xf32, #tpu.memory_space<vmem>>, %arg3: memref<16x128xbf16, #tpu.memory_space<vmem>>, %arg4: memref<16x128xbf16, #tpu.memory_space<vmem>>, %arg5: memref<1x128xf32, #tpu.memory_space<vmem>>, %arg6: memref<128x128xbf16, #tpu.memory_space<vmem>>, %arg7: memref<1x128xf32, #tpu.memory_space<vmem>>, %arg8: memref<128x128xbf16, #tpu.memory_space<vmem>>, %arg9: memref<1x128xf32, #tpu.memory_space<vmem>>, %arg10: memref<16x128xf32, #tpu.memory_space<vmem>>) attributes {dimension_semantics = [#tpu.dimension_semantics<parallel>], iteration_bounds = array<i64: 1>, scalar_prefetch = 0 : i64, scratch_operands = 0 : i64, tpu.core_type = #tpu.core_type<tc>, window_params = [{transform_indices = @transform_0, window_bounds = array<i64: 16, 16>}, {transform_indices = @transform_1, window_bounds = array<i64: 16, 16>}, {pipeline_mode = #tpu.pipeline_mode<synchronous>, transform_indices = @transform_2, window_bounds = array<i64: 16, 128>}, {pipeline_mode = #tpu.pipeline_mode<synchronous>, transform_indices = @transform_3, window_bounds = array<i64: 16, 128>}, {pipeline_mode = #tpu.pipeline_mode<synchronous>, transform_indices = @transform_4, window_bounds = array<i64: 1, 128>}, {pipeline_mode = #tpu.pipeline_mode<synchronous>, transform_indices = @transform_5, window_bounds = array<i64: 128, 128>}, {pipeline_mode = #tpu.pipeline_mode<synchronous>, transform_indices = @transform_6, window_bounds = array<i64: 1, 128>}, {pipeline_mode = #tpu.pipeline_mode<synchronous>, transform_indices = @transform_7, window_bounds = array<i64: 128, 128>}, {pipeline_mode = #tpu.pipeline_mode<synchronous>, transform_indices = @transform_8, window_bounds = array<i64: 1, 128>}, {transform_indices = @transform_9, window_bounds = array<i64: 16, 128>}]} {
    %c0 = arith.constant 0 : index
    %c0_0 = arith.constant 0 : index
    %0 = vector.load %arg1[%c0, %c0_0] : memref<16x16xf32, #tpu.memory_space<vmem>>, vector<16x16xf32>
    %1 = arith.truncf %0 : vector<16x16xf32> to vector<16x16xbf16>
    %c0_1 = arith.constant 0 : index
    %c0_2 = arith.constant 0 : index
    %2 = vector.load %arg2[%c0_1, %c0_2] : memref<16x16xf32, #tpu.memory_space<vmem>>, vector<16x16xf32>
    %3 = arith.truncf %2 : vector<16x16xf32> to vector<16x16xbf16>
    %c0_3 = arith.constant 0 : index
    %c0_4 = arith.constant 0 : index
    %4 = vector.load %arg3[%c0_3, %c0_4] : memref<16x128xbf16, #tpu.memory_space<vmem>>, vector<16x128xbf16>
    %cst = arith.constant dense<0.000000e+00> : vector<16x128xf32>
    %5 = tpu.matmul %1, %4, %cst {dimension_numbers = #tpu.dot_dimension_numbers<[1], [0], [0], [1], [0, 0, 1, 1], [], []>} : vector<16x16xbf16>, vector<16x128xbf16>, vector<16x128xf32> -> vector<16x128xf32>
    %c0_5 = arith.constant 0 : index
    %c0_6 = arith.constant 0 : index
    %6 = vector.load %arg4[%c0_5, %c0_6] : memref<16x128xbf16, #tpu.memory_space<vmem>>, vector<16x128xbf16>
    %cst_7 = arith.constant dense<0.000000e+00> : vector<16x128xf32>
    %7 = tpu.matmul %3, %6, %cst_7 {dimension_numbers = #tpu.dot_dimension_numbers<[1], [0], [0], [1], [0, 0, 1, 1], [], []>} : vector<16x16xbf16>, vector<16x128xbf16>, vector<16x128xf32> -> vector<16x128xf32>
    %8 = arith.addf %5, %7 : vector<16x128xf32>
    %c0_8 = arith.constant 0 : index
    %c0_9 = arith.constant 0 : index
    %9 = vector.load %arg5[%c0_8, %c0_9] : memref<1x128xf32, #tpu.memory_space<vmem>>, vector<1x128xf32>
    %10 = vector.broadcast %9 : vector<1x128xf32> to vector<16x128xf32>
    %11 = arith.addf %8, %10 : vector<16x128xf32>
    %cst_10 = arith.constant 0.00999999977 : f32
    %12 = vector.broadcast %cst_10 : f32 to vector<16x128xf32>
    %13 = arith.mulf %12, %11 : vector<16x128xf32>
    %14 = arith.maximumf %11, %13 : vector<16x128xf32>
    %15 = arith.truncf %14 : vector<16x128xf32> to vector<16x128xbf16>
    %c0_11 = arith.constant 0 : index
    %c0_12 = arith.constant 0 : index
    %16 = vector.load %arg6[%c0_11, %c0_12] : memref<128x128xbf16, #tpu.memory_space<vmem>>, vector<128x128xbf16>
    %cst_13 = arith.constant dense<0.000000e+00> : vector<16x128xf32>
    %17 = tpu.matmul %15, %16, %cst_13 {dimension_numbers = #tpu.dot_dimension_numbers<[1], [0], [0], [1], [0, 0, 1, 1], [], []>} : vector<16x128xbf16>, vector<128x128xbf16>, vector<16x128xf32> -> vector<16x128xf32>
    %c0_14 = arith.constant 0 : index
    %c0_15 = arith.constant 0 : index
    %18 = vector.load %arg7[%c0_14, %c0_15] : memref<1x128xf32, #tpu.memory_space<vmem>>, vector<1x128xf32>
    %19 = vector.broadcast %18 : vector<1x128xf32> to vector<16x128xf32>
    %20 = arith.addf %17, %19 : vector<16x128xf32>
    %cst_16 = arith.constant 0.00999999977 : f32
    %21 = vector.broadcast %cst_16 : f32 to vector<16x128xf32>
    %22 = arith.mulf %21, %20 : vector<16x128xf32>
    %23 = arith.maximumf %20, %22 : vector<16x128xf32>
    %24 = arith.addf %23, %14 : vector<16x128xf32>
    %25 = arith.truncf %24 : vector<16x128xf32> to vector<16x128xbf16>
    %c0_17 = arith.constant 0 : index
    %c0_18 = arith.constant 0 : index
    %26 = vector.load %arg8[%c0_17, %c0_18] : memref<128x128xbf16, #tpu.memory_space<vmem>>, vector<128x128xbf16>
    %cst_19 = arith.constant dense<0.000000e+00> : vector<16x128xf32>
    %27 = tpu.matmul %25, %26, %cst_19 {dimension_numbers = #tpu.dot_dimension_numbers<[1], [0], [0], [1], [0, 0, 1, 1], [], []>} : vector<16x128xbf16>, vector<128x128xbf16>, vector<16x128xf32> -> vector<16x128xf32>
    %c0_20 = arith.constant 0 : index
    %c0_21 = arith.constant 0 : index
    %28 = vector.load %arg9[%c0_20, %c0_21] : memref<1x128xf32, #tpu.memory_space<vmem>>, vector<1x128xf32>
    %29 = vector.broadcast %28 : vector<1x128xf32> to vector<16x128xf32>
    %30 = arith.addf %27, %29 : vector<16x128xf32>
    %cst_22 = arith.constant 0.00999999977 : f32
    %31 = vector.broadcast %cst_22 : f32 to vector<16x128xf32>
    %32 = arith.mulf %31, %30 : vector<16x128xf32>
    %33 = arith.maximumf %30, %32 : vector<16x128xf32>
    %c0_23 = arith.constant 0 : index
    %c0_24 = arith.constant 0 : index
    %34 = vector.load %arg10[%c0_23, %c0_24] : memref<16x128xf32, #tpu.memory_space<vmem>>, vector<16x128xf32>
    tpu.vector_store %arg10[%c0_23, %c0_24], %33 {strides = array<i32>} : memref<16x128xf32, #tpu.memory_space<vmem>>, vector<16x128xf32>,
    return
  }
  func.func @transform_0(%arg0: i32) -> (i32, i32) {
    %c0_i32 = arith.constant 0 : i32
    %c0_i32_0 = arith.constant 0 : i32
    return %arg0, %c0_i32 : i32, i32
  }
  func.func @transform_1(%arg0: i32) -> (i32, i32) {
    %c0_i32 = arith.constant 0 : i32
    %c0_i32_0 = arith.constant 0 : i32
    return %arg0, %c0_i32 : i32, i32
  }
  func.func @transform_2(%arg0: i32) -> (i32, i32) {
    %c0_i32 = arith.constant 0 : i32
    %c0_i32_0 = arith.constant 0 : i32
    %c0_i32_1 = arith.constant 0 : i32
    return %c0_i32, %c0_i32_0 : i32, i32
  }
  func.func @transform_3(%arg0: i32) -> (i32, i32) {
    %c0_i32 = arith.constant 0 : i32
    %c0_i32_0 = arith.constant 0 : i32
    %c0_i32_1 = arith.constant 0 : i32
    return %c0_i32, %c0_i32_0 : i32, i32
  }
  func.func @transform_4(%arg0: i32) -> (i32, i32) {
    %c0_i32 = arith.constant 0 : i32
    %c0_i32_0 = arith.constant 0 : i32
    %c0_i32_1 = arith.constant 0 : i32
    return %c0_i32, %c0_i32_0 : i32, i32
  }
  func.func @transform_5(%arg0: i32) -> (i32, i32) {
    %c0_i32 = arith.constant 0 : i32
    %c0_i32_0 = arith.constant 0 : i32
    %c0_i32_1 = arith.constant 0 : i32
    return %c0_i32, %c0_i32_0 : i32, i32
  }
  func.func @transform_6(%arg0: i32) -> (i32, i32) {
    %c0_i32 = arith.constant 0 : i32
    %c0_i32_0 = arith.constant 0 : i32
    %c0_i32_1 = arith.constant 0 : i32
    return %c0_i32, %c0_i32_0 : i32, i32
  }
  func.func @transform_7(%arg0: i32) -> (i32, i32) {
    %c0_i32 = arith.constant 0 : i32
    %c0_i32_0 = arith.constant 0 : i32
    %c0_i32_1 = arith.constant 0 : i32
    return %c0_i32, %c0_i32_0 : i32, i32
  }
  func.func @transform_8(%arg0: i32) -> (i32, i32) {
    %c0_i32 = arith.constant 0 : i32
    %c0_i32_0 = arith.constant 0 : i32
    %c0_i32_1 = arith.constant 0 : i32
    return %c0_i32, %c0_i32_0 : i32, i32
  }
  func.func @transform_9(%arg0: i32) -> (i32, i32) {
    %c0_i32 = arith.constant 0 : i32
    %c0_i32_0 = arith.constant 0 : i32
    return %arg0, %c0_i32 : i32, i32
  }
}

module attributes {stable_mosaic.version = 11 : i64} {
  func.func @fusion_kernel(%arg0: i32, %arg1: memref<16x16xf32, #tpu.memory_space<vmem>>, %arg2: memref<16x16xf32, #tpu.memory_space<vmem>>, %arg3: memref<16x128xbf16, #tpu.memory_space<vmem>>, %arg4: memref<16x128xbf16, #tpu.memory_space<vmem>>, %arg5: memref<1x128xf32, #tpu.memory_space<vmem>>, %arg6: memref<128x128xbf16, #tpu.memory_space<vmem>>, %arg7: memref<1x128xf32, #tpu.memory_space<vmem>>, %arg8: memref<128x128xbf16, #tpu.memory_space<vmem>>, %arg9: memref<1x128xf32, #tpu.memory_space<vmem>>, %arg10: memref<16x128xf32, #tpu.memory_space<vmem>>) attributes {dimension_semantics = [#tpu.dimension_semantics<parallel>], iteration_bounds = array<i64: 1>, scalar_prefetch = 0 : i64, scratch_operands = 0 : i64, tpu.core_type = #tpu.core_type<tc>, window_params = [{transform_indices = @transform_0, window_bounds = array<i64: 16, 16>}, {transform_indices = @transform_1, window_bounds = array<i64: 16, 16>}, {pipeline_mode = #tpu.pipeline_mode<synchronous>, transform_indices = @transform_2, window_bounds = array<i64: 16, 128>}, {pipeline_mode = #tpu.pipeline_mode<synchronous>, transform_indices = @transform_3, window_bounds = array<i64: 16, 128>}, {pipeline_mode = #tpu.pipeline_mode<synchronous>, transform_indices = @transform_4, window_bounds = array<i64: 1, 128>}, {pipeline_mode = #tpu.pipeline_mode<synchronous>, transform_indices = @transform_5, window_bounds = array<i64: 128, 128>}, {pipeline_mode = #tpu.pipeline_mode<synchronous>, transform_indices = @transform_6, window_bounds = array<i64: 1, 128>}, {pipeline_mode = #tpu.pipeline_mode<synchronous>, transform_indices = @transform_7, window_bounds = array<i64: 128, 128>}, {pipeline_mode = #tpu.pipeline_mode<synchronous>, transform_indices = @transform_8, window_bounds = array<i64: 1, 128>}, {transform_indices = @transform_9, window_bounds = array<i64: 16, 128>}]} {
    %c0 = arith.constant 0 : index
    %c0_0 = arith.constant 0 : index
    %0 = vector.load %arg1[%c0, %c0_0] : memref<16x16xf32, #tpu.memory_space<vmem>>, vector<16x16xf32>
    %1 = arith.truncf %0 : vector<16x16xf32> to vector<16x16xbf16>
    %c0_1 = arith.constant 0 : index
    %c0_2 = arith.constant 0 : index
    %2 = vector.load %arg2[%c0_1, %c0_2] : memref<16x16xf32, #tpu.memory_space<vmem>>, vector<16x16xf32>
    %3 = arith.truncf %2 : vector<16x16xf32> to vector<16x16xbf16>
    %c0_3 = arith.constant 0 : index
    %c0_4 = arith.constant 0 : index
    %4 = vector.load %arg3[%c0_3, %c0_4] : memref<16x128xbf16, #tpu.memory_space<vmem>>, vector<16x128xbf16>
    %cst = arith.constant dense<0.000000e+00> : vector<16x128xf32>
    %5 = tpu.matmul %1, %4, %cst {dimension_numbers = #tpu.dot_dimension_numbers<[1], [0], [0], [1], [0, 0, 1, 1], [], []>} : vector<16x16xbf16>, vector<16x128xbf16>, vector<16x128xf32> -> vector<16x128xf32>
    %c0_5 = arith.constant 0 : index
    %c0_6 = arith.constant 0 : index
    %6 = vector.load %arg4[%c0_5, %c0_6] : memref<16x128xbf16, #tpu.memory_space<vmem>>, vector<16x128xbf16>
    %cst_7 = arith.constant dense<0.000000e+00> : vector<16x128xf32>
    %7 = tpu.matmul %3, %6, %cst_7 {dimension_numbers = #tpu.dot_dimension_numbers<[1], [0], [0], [1], [0, 0, 1, 1], [], []>} : vector<16x16xbf16>, vector<16x128xbf16>, vector<16x128xf32> -> vector<16x128xf32>
    %8 = arith.addf %5, %7 : vector<16x128xf32>
    %c0_8 = arith.constant 0 : index
    %c0_9 = arith.constant 0 : index
    %9 = vector.load %arg5[%c0_8, %c0_9] : memref<1x128xf32, #tpu.memory_space<vmem>>, vector<1x128xf32>
    %10 = vector.broadcast %9 : vector<1x128xf32> to vector<16x128xf32>
    %11 = arith.addf %8, %10 : vector<16x128xf32>
    %cst_10 = arith.constant 0.00999999977 : f32
    %12 = vector.broadcast %cst_10 : f32 to vector<16x128xf32>
    %13 = arith.mulf %12, %11 : vector<16x128xf32>
    %14 = arith.maximumf %11, %13 : vector<16x128xf32>
    %15 = arith.truncf %14 : vector<16x128xf32> to vector<16x128xbf16>
    %c0_11 = arith.constant 0 : index
    %c0_12 = arith.constant 0 : index
    %16 = vector.load %arg6[%c0_11, %c0_12] : memref<128x128xbf16, #tpu.memory_space<vmem>>, vector<128x128xbf16>
    %cst_13 = arith.constant dense<0.000000e+00> : vector<16x128xf32>
    %17 = tpu.matmul %15, %16, %cst_13 {dimension_numbers = #tpu.dot_dimension_numbers<[1], [0], [0], [1], [0, 0, 1, 1], [], []>} : vector<16x128xbf16>, vector<128x128xbf16>, vector<16x128xf32> -> vector<16x128xf32>
    %c0_14 = arith.constant 0 : index
    %c0_15 = arith.constant 0 : index
    %18 = vector.load %arg7[%c0_14, %c0_15] : memref<1x128xf32, #tpu.memory_space<vmem>>, vector<1x128xf32>
    %19 = vector.broadcast %18 : vector<1x128xf32> to vector<16x128xf32>
    %20 = arith.addf %17, %19 : vector<16x128xf32>
    %cst_16 = arith.constant 0.00999999977 : f32
    %21 = vector.broadcast %cst_16 : f32 to vector<16x128xf32>
    %22 = arith.mulf %21, %20 : vector<16x128xf32>
    %23 = arith.maximumf %20, %22 : vector<16x128xf32>
    %24 = arith.addf %23, %14 : vector<16x128xf32>
    %25 = arith.truncf %24 : vector<16x128xf32> to vector<16x128xbf16>
    %c0_17 = arith.constant 0 : index
    %c0_18 = arith.constant 0 : index
    %26 = vector.load %arg8[%c0_17, %c0_18] : memref<128x128xbf16, #tpu.memory_space<vmem>>, vector<128x128xbf16>
    %cst_19 = arith.constant dense<0.000000e+00> : vector<16x128xf32>
    %27 = tpu.matmul %25, %26, %cst_19 {dimension_numbers = #tpu.dot_dimension_numbers<[1], [0], [0], [1], [0, 0, 1, 1], [], []>} : vector<16x128xbf16>, vector<128x128xbf16>, vector<16x128xf32> -> vector<16x128xf32>
    %c0_20 = arith.constant 0 : index
    %c0_21 = arith.constant 0 : index
    %28 = vector.load %arg9[%c0_20, %c0_21] : memref<1x128xf32, #tpu.memory_space<vmem>>, vector<1x128xf32>
    %29 = vector.broadcast %28 : vector<1x128xf32> to vector<16x128xf32>
    %30 = arith.addf %27, %29 : vector<16x128xf32>
    %cst_22 = arith.constant 0.00999999977 : f32
    %31 = vector.broadcast %cst_22 : f32 to vector<16x128xf32>
    %32 = arith.mulf %31, %30 : vector<16x128xf32>
    %33 = arith.maximumf %30, %32 : vector<16x128xf32>
    %c0_23 = arith.constant 0 : index
    %c0_24 = arith.constant 0 : index
    %34 = vector.load %arg10[%c0_23, %c0_24] : memref<16x128xf32, #tpu.memory_space<vmem>>, vector<16x128xf32>
    tpu.vector_store %arg10[%c0_23, %c0_24], %33 {strides = array<i32>} : memref<16x128xf32, #tpu.memory_space<vmem>>, vector<16x128xf32>,
    return
  }
  func.func @transform_0(%arg0: i32) -> (i32, i32) {
    %c0_i32 = arith.constant 0 : i32
    %c0_i32_0 = arith.constant 0 : i32
    return %arg0, %c0_i32 : i32, i32
  }
  func.func @transform_1(%arg0: i32) -> (i32, i32) {
    %c0_i32 = arith.constant 0 : i32
    %c0_i32_0 = arith.constant 0 : i32
    return %arg0, %c0_i32 : i32, i32
  }
  func.func @transform_2(%arg0: i32) -> (i32, i32) {
    %c0_i32 = arith.constant 0 : i32
    %c0_i32_0 = arith.constant 0 : i32
    %c0_i32_1 = arith.constant 0 : i32
    return %c0_i32, %c0_i32_0 : i32, i32
  }
  func.func @transform_3(%arg0: i32) -> (i32, i32) {
    %c0_i32 = arith.constant 0 : i32
    %c0_i32_0 = arith.constant 0 : i32
    %c0_i32_1 = arith.constant 0 : i32
    return %c0_i32, %c0_i32_0 : i32, i32
  }
  func.func @transform_4(%arg0: i32) -> (i32, i32) {
    %c0_i32 = arith.constant 0 : i32
    %c0_i32_0 = arith.constant 0 : i32
    %c0_i32_1 = arith.constant 0 : i32
    return %c0_i32, %c0_i32_0 : i32, i32
  }
  func.func @transform_5(%arg0: i32) -> (i32, i32) {
    %c0_i32 = arith.constant 0 : i32
    %c0_i32_0 = arith.constant 0 : i32
    %c0_i32_1 = arith.constant 0 : i32
    return %c0_i32, %c0_i32_0 : i32, i32
  }
  func.func @transform_6(%arg0: i32) -> (i32, i32) {
    %c0_i32 = arith.constant 0 : i32
    %c0_i32_0 = arith.constant 0 : i32
    %c0_i32_1 = arith.constant 0 : i32
    return %c0_i32, %c0_i32_0 : i32, i32
  }
  func.func @transform_7(%arg0: i32) -> (i32, i32) {
    %c0_i32 = arith.constant 0 : i32
    %c0_i32_0 = arith.constant 0 : i32
    %c0_i32_1 = arith.constant 0 : i32
    return %c0_i32, %c0_i32_0 : i32, i32
  }
  func.func @transform_8(%arg0: i32) -> (i32, i32) {
    %c0_i32 = arith.constant 0 : i32
    %c0_i32_0 = arith.constant 0 : i32
    %c0_i32_1 = arith.constant 0 : i32
    return %c0_i32, %c0_i32_0 : i32, i32
  }
  func.func @transform_9(%arg0: i32) -> (i32, i32) {
    %c0_i32 = arith.constant 0 : i32
    %c0_i32_0 = arith.constant 0 : i32
    return %arg0, %c0_i32 : i32, i32
  }
}

</mosaic_0001>

<bundles_post_ra>
// kernel: tpu_custom_call.1
= control target key start
LH: loop header
LB: loop body
LE: loop exit
PB: predicated region body
PF: predicated region fallthrough
CT: control target
= control target key end

     0   :  { %14 = vsyncpa [#allocation3], 0  ;;  %s940_s0 = inlined_call_operand.hbm [shape: f32[16,16], index: 0, kind: input, shape index: {}]   ;;  %s941_s1 = inlined_call_operand.hbm [shape: f32[16,16], index: 1, kind: input, shape index: {}]   ;;  %s942_s2 = inlined_call_operand.hbm [shape: bf16[16,128], index: 2, kind: input, shape index: {}]   ;;  %s943_s3 = inlined_call_operand.vmem [shape: bf16[16,128], index: 3, kind: input, shape index: {}]   ;;  %s944_s4 = inlined_call_operand.vmem [shape: f32[1,128], index: 4, kind: input, shape index: {}]   ;;  %s945_s5 = inlined_call_operand.hbm [shape: bf16[128,128], index: 5, kind: input, shape index: {}]   ;;  %s946_s6 = inlined_call_operand.vmem [shape: f32[1,128], index: 6, kind: input, shape index: {}]   ;;  %s947_s7 = inlined_call_operand.hbm [shape: bf16[128,128], index: 7, kind: input, shape index: {}]   ;;  %s948_s8 = inlined_call_operand.vmem [shape: f32[1,128], index: 8, kind: input, shape index: {}]   ;;  %s949_s9 = inlined_call_operand.hbm [shape: f32[16,128], index: 9, kind: output, shape index: {}]  }
   0x1   :  { %15 = vsyncpa [#allocation6], 0 }
   0x2   :  { %16 = vsyncpa [#allocation9], 0 }
   0x3   :  { %17 = vsyncpa [#allocation4], 0  ;;  %s750_s30 = smov [#allocation5]   ;;  %s610_s13 = scalar_lea.hbm %s941_s1, 256 }
   0x4   :  { %s35_s10 = sshll.u32 %s750_s30, 4  ;;  %p611_p0 = scmp.ne.s32.totalorder %s941_s1, %s610_s13  ;;  %s36_s10 = int_to_ptr.vmem [resolvable:$true] %s35_s10 }
   0x5   :  { %p614_p1 = scmp.lt.u32.totalorder %s610_s13, %s941_s1 }
   0x7   :  { %p616_p2 = pnand %p614_p1, %p611_p0 }
   0x9   :  { %619 = shalt.err (!%p616_p2)
}
   0xa   :  { %s620_s18 = scalar_lea.vmem %s36_s10, 256  ;;  %p625_p4 = scmp.lt.s32.totalorder %s36_s10, %s36_s10 }
   0xb   :  { %p621_p3 = scmp.ne.s32.totalorder %s36_s10, %s620_s18  ;;  %p626_p5 = scmp.lt.s32.totalorder %s620_s18, %s620_s18 }
   0xd   :  { %p627_p6 = por %p626_p5, %p625_p4 }
   0xf   :  { %p628_p7 = pnand %p627_p6, %p621_p3 }
  0x11   :  { %631 = shalt.err (!%p628_p7)
}
  0x12   :  { %s751_s19 = smov 128   ;;  %s752_s20 = smov 8  }
  0x13   :  { %41 = dma.hbm_to_vmem [thread:$0]  %s941_s1, 256, %s36_s10, [#allocation6], %s751_s19, %s751_s19, %s752_s20  }
  0x14   :  { %s753_s23 = smov [#allocation8]   ;;  %s754_s25 = smov [#allocation2]  }
  0x15   :  { %s63_s24 = sshll.u32 %s753_s23, 4  ;;  %s23_s26 = sshll.u32 %s754_s25, 4  ;;  %s64_s24 = int_to_ptr.vmem [resolvable:$true] %s63_s24  ;;  %s24_s26 = int_to_ptr.vmem [resolvable:$true] %s23_s26 }
  0x16   :  { %s632_s29 = scalar_lea.hbm %s945_s5, 1024 }
  0x17   :  { %p633_p8 = scmp.ne.s32.totalorder %s945_s5, %s632_s29  ;;  %p636_p9 = scmp.lt.u32.totalorder %s632_s29, %s945_s5 }
  0x19   :  { %p638_p10 = pnand %p636_p9, %p633_p8 }
  0x1b   :  { %641 = shalt.err (!%p638_p10)
}
  0x1c   :  { %s642_s1 = scalar_lea.vmem %s64_s24, 1024  ;;  %p647_p12 = scmp.lt.s32.totalorder %s64_s24, %s64_s24 }
  0x1d   :  { %p643_p11 = scmp.ne.s32.totalorder %s64_s24, %s642_s1  ;;  %p648_p13 = scmp.lt.s32.totalorder %s642_s1, %s642_s1 }
  0x1f   :  { %p649_p0 = por %p648_p13, %p647_p12 }
  0x21   :  { %p650_p1 = pnand %p649_p0, %p643_p11 }
  0x23   :  { %653 = shalt.err (!%p650_p1)
}
  0x24   :  { %s755_s10 = smov 64   ;;  %s756_s14 = smov 4  }
  0x25   :  { %69 = dma.hbm_to_vmem [thread:$0]  %s945_s5, 1024, %s64_s24, [#allocation9], %s755_s10, %s755_s10, %s756_s14  }
  0x26   :  { %s654_s21 = scalar_lea.hbm %s940_s0, 256 }
  0x27   :  { %p655_p2 = scmp.ne.s32.totalorder %s940_s0, %s654_s21  ;;  %p658_p3 = scmp.lt.u32.totalorder %s654_s21, %s940_s0 }
  0x29   :  { %p660_p4 = pnand %p658_p3, %p655_p2 }
  0x2b   :  { %663 = shalt.err (!%p660_p4)
}
  0x2c   :  { %s664_s28 = scalar_lea.vmem %s24_s26, 256  ;;  %p669_p6 = scmp.lt.s32.totalorder %s24_s26, %s24_s26 }
  0x2d   :  { %p665_p5 = scmp.ne.s32.totalorder %s24_s26, %s664_s28  ;;  %p670_p7 = scmp.lt.s32.totalorder %s664_s28, %s664_s28 }
  0x2f   :  { %p671_p8 = por %p670_p7, %p669_p6 }
  0x31   :  { %p672_p9 = pnand %p671_p8, %p665_p5 }
  0x33   :  { %675 = shalt.err (!%p672_p9)
}
  0x34   :  { %29 = dma.hbm_to_vmem [thread:$0]  %s940_s0, 256, %s24_s26, [#allocation3], %s751_s19, %s751_s19, %s752_s20  }
  0x35   :  { %s757_s29 = smov [#allocation7]   ;;  %s758_s11 = smov [#allocation10]  }
  0x36   :  { %s47_s30 = sshll.u32 %s757_s29, 4  ;;  %s77_s12 = sshll.u32 %s758_s11, 4  ;;  %s48_s30 = int_to_ptr.vmem [resolvable:$true] %s47_s30  ;;  %s78_s12 = int_to_ptr.vmem [resolvable:$true] %s77_s12 }
  0x37   :  { %s676_s15 = scalar_lea.hbm %s942_s2, 128 }
  0x38   :  { %p677_p10 = scmp.ne.s32.totalorder %s942_s2, %s676_s15  ;;  %p680_p11 = scmp.lt.u32.totalorder %s676_s15, %s942_s2 }
  0x3a   :  { %p682_p12 = pnand %p680_p11, %p677_p10 }
  0x3c   :  { %685 = shalt.err (!%p682_p12)
}
  0x3d   :  { %s686_s0 = scalar_lea.vmem %s48_s30, 128  ;;  %p691_p0 = scmp.lt.s32.totalorder %s48_s30, %s48_s30 }
  0x3e   :  { %p687_p13 = scmp.ne.s32.totalorder %s48_s30, %s686_s0  ;;  %p692_p1 = scmp.lt.s32.totalorder %s686_s0, %s686_s0 }
  0x40   :  { %p693_p2 = por %p692_p1, %p691_p0 }
  0x42   :  { %p694_p3 = pnand %p693_p2, %p687_p13 }
  0x44   :  { %697 = shalt.err (!%p694_p3)
}
  0x45   :  { %53 = dma.hbm_to_vmem [thread:$0]  %s942_s2, 128, %s48_s30, [#allocation6], %s755_s10, %s755_s10, %s756_s14  }
  0x46   :  { %s698_s27 = scalar_lea.hbm %s947_s7, 1024 }
  0x47   :  { %p699_p4 = scmp.ne.s32.totalorder %s947_s7, %s698_s27  ;;  %p702_p5 = scmp.lt.u32.totalorder %s698_s27, %s947_s7 }
  0x49   :  { %p704_p6 = pnand %p702_p5, %p699_p4 }
  0x4b   :  { %707 = shalt.err (!%p704_p6)
}
  0x4c   :  { %s708_s11 = scalar_lea.vmem %s78_s12, 1024  ;;  %p713_p8 = scmp.lt.s32.totalorder %s78_s12, %s78_s12 }
  0x4d   :  { %p709_p7 = scmp.ne.s32.totalorder %s78_s12, %s708_s11  ;;  %p714_p9 = scmp.lt.s32.totalorder %s708_s11, %s708_s11 }
  0x4f   :  { %p715_p10 = por %p714_p9, %p713_p8 }
  0x51   :  { %p716_p11 = pnand %p715_p10, %p709_p7 }
  0x53   :  { %719 = shalt.err (!%p716_p11)
}
  0x54   :  { %83 = dma.hbm_to_vmem [thread:$0]  %s947_s7, 1024, %s78_s12, [#allocation9], %s755_s10, %s755_s10, %s756_s14  }
  0x55   :  { %742 = dma.done.wait [#allocation3], 256  }
  0x56   :  { %743 = vsyncadd [#allocation3], 4294967040 }
  0x57   :  { %744 = dma.done.wait [#allocation6], 384  }
  0x58   :  { %745 = vsyncadd [#allocation6], 4294966912 }
  0x59   :  { %746 = dma.done.wait [#allocation9], 2048  }
  0x5a   :  { %747 = vsyncadd [#allocation9], 4294965248  ;;  %v759_v0 = vmov 0.0   ;;  %vm760_vm0 = vmmov 0   ;;  %v592_v1 = vld [vmem:[%s943_s3] sm:$0xff]   ;;  %v105_v3 = vld [vmem:[#allocation5] sm:$0xff] }
  0x5b   :  { %528 = vmatprep.subr.bf16.mxu0 %v759_v0  ;;  %534 = vmatprep.subr.bf16.mxu1 %v759_v0  ;;  %v593_v2 = vld [vmem:[#allocation7] sm:$0xff]   ;;  %v106_v4 = vld [vmem:[#allocation5 + $0x8] sm:$0xff]  ;;  %vm118_vm1 = vcmask 130048   ;;  %v103_v7 = vld [vmem:[#allocation2 + $0x8] sm:$0xff] }
  0x5c   :  { %530 = vmatprep.mubr.msk.bf16.mxu0 %vm760_vm0, %v759_v0  ;;  %536 = vmatprep.mubr.msk.bf16.mxu1 %vm760_vm0, %v759_v0  ;;  %v102_v5 = vld [vmem:[#allocation2] sm:$0xff]  ;;  %v107_v6 = vpack.c.bf16 %v106_v4, %v105_v3  ;;  %v594_v9 = vld [vmem:[#allocation8] sm:$0xff]   ;;  %v595_v10 = vld [vmem:[#allocation8 + $0x8] sm:$0xff]  }
  0x5d   :  { %529 = vmatpush3.bf16.msra.mxu0 %v592_v1  ;;  %535 = vmatpush3.bf16.msra.mxu1 %v593_v2  ;;  %v104_v8 = vpack.c.bf16 %v103_v7, %v102_v5  ;;  %v596_v11 = vld [vmem:[#allocation8 + $0x10] sm:$0xff]   ;;  %v597_v12 = vld [vmem:[#allocation8 + $0x18] sm:$0xff]   ;;  %v598_v13 = vld [vmem:[#allocation8 + $0x20] sm:$0xff]  }
  0x5e   :  { %540 = vmatprep.subr.bf16.mxu0 %v759_v0  ;;  %560 = vmatprep.subr.bf16.mxu1 %v759_v0  ;;  %v599_v14 = vld [vmem:[#allocation8 + $0x28] sm:$0xff]   ;;  %v600_v15 = vld [vmem:[#allocation8 + $0x30] sm:$0xff]   ;;  %v601_v16 = vld [vmem:[#allocation8 + $0x38] sm:$0xff]  }
  0x5f   :  { %v602_v17 = vld [vmem:[#allocation10] sm:$0xff]   ;;  %v603_v18 = vld [vmem:[#allocation10 + $0x8] sm:$0xff]   ;;  %v604_v19 = vld [vmem:[#allocation10 + $0x10] sm:$0xff]  }
  0x60   :  { %531 = vmatmul.mubr.msk.bf16.vlgmr.msra.gmra.mrb[0].mxu0 %vm118_vm1, %v107_v6  ;;  %537 = vmatmul.mubr.msk.bf16.vlgmr.msra.gmra.mrb[0].mxu1 %vm118_vm1, %v104_v8  ;;  %v605_v20 = vld [vmem:[#allocation10 + $0x18] sm:$0xff]   ;;  %v606_v21 = vld [vmem:[#allocation10 + $0x20] sm:$0xff]   ;;  %v607_v40 = vld [vmem:[#allocation10 + $0x28] sm:$0xff]  }
  0x61   :  { %541 = vmatpush3.bf16.msra.mxu0 %v594_v9  ;;  %556 = vmatprep.mubr.msk.bf16.mxu0 %vm760_vm0, %v759_v0  ;;  %v487_v24 = vld [vmem:[%s944_s4] ss:$0 sm:$0xff]  ;;  %v608_v41 = vld [vmem:[#allocation10 + $0x30] sm:$0xff]  }
  0x62   :  { %542 = vmatprep.subr.bf16.mxu0 %v759_v0  ;;  %576 = vmatprep.mubr.msk.bf16.mxu1 %vm760_vm0, %v759_v0  ;;  %v609_v42 = vld [vmem:[#allocation10 + $0x38] sm:$0xff]  }
  0x63   :  { %561 = vmatpush3.bf16.msra.mxu1 %v602_v17  ;;  %v488_v43 = vld [vmem:[%s946_s6] ss:$0 sm:$0xff]  ;;  %s761_s6 = smov [#allocation11]  }
  0x64   :  { %562 = vmatprep.subr.bf16.mxu1 %v759_v0  ;;  %v497_v57 = vld [vmem:[%s948_s8] ss:$0 sm:$0xff]  ;;  %s469_s15 = sshll.u32 %s761_s6, 4  ;;  %s470_s15 = int_to_ptr.vmem [resolvable:$true] %s469_s15 }
  0x65   :  { %543 = vmatpush3.bf16.msra.mxu0 %v595_v10  ;;  %s720_s16 = scalar_lea.vmem %s470_s15, 256  ;;  %p725_p13 = scmp.lt.s32.totalorder %s470_s15, %s470_s15 }
  0x66   :  { %544 = vmatprep.subr.bf16.mxu0 %v759_v0  ;;  %p721_p12 = scmp.ne.s32.totalorder %s470_s15, %s720_s16  ;;  %p726_p0 = scmp.lt.s32.totalorder %s720_s16, %s720_s16 }
  0x67   :  { %563 = vmatpush3.bf16.msra.mxu1 %v603_v18 }
  0x68   :  { %564 = vmatprep.subr.bf16.mxu1 %v759_v0  ;;  %p727_p1 = por %p726_p0, %p725_p13 }
  0x69   :  { %545 = vmatpush3.bf16.msra.mxu0 %v596_v11 }
  0x6a   :  { %546 = vmatprep.subr.bf16.mxu0 %v759_v0  ;;  %p728_p2 = pnand %p727_p1, %p721_p12 }
  0x6b   :  { %565 = vmatpush3.bf16.msra.mxu1 %v604_v19 }
  0x6c   :  { %566 = vmatprep.subr.bf16.mxu1 %v759_v0 }
  0x6d   :  { %547 = vmatpush3.bf16.msra.mxu0 %v597_v12 }
  0x6e   :  { %548 = vmatprep.subr.bf16.mxu0 %v759_v0 }
  0x6f   :  { %567 = vmatpush3.bf16.msra.mxu1 %v605_v20 }
  0x70   :  { %568 = vmatprep.subr.bf16.mxu1 %v759_v0 }
  0x71   :  { %549 = vmatpush3.bf16.msra.mxu0 %v598_v13 }
  0x72   :  { %550 = vmatprep.subr.bf16.mxu0 %v759_v0 }
  0x73   :  { %569 = vmatpush3.bf16.msra.mxu1 %v606_v21 }
  0x74   :  { %570 = vmatprep.subr.bf16.mxu1 %v759_v0 }
  0x75   :  { %551 = vmatpush3.bf16.msra.mxu0 %v599_v14 }
  0x76   :  { %552 = vmatprep.subr.bf16.mxu0 %v759_v0 }
  0x77   :  { %571 = vmatpush3.bf16.msra.mxu1 %v607_v40 }
  0x78   :  { %572 = vmatprep.subr.bf16.mxu1 %v759_v0 }
  0x79   :  { %553 = vmatpush3.bf16.msra.mxu0 %v600_v15 }
  0x7a   :  { %554 = vmatprep.subr.bf16.mxu0 %v759_v0 }
  0x7b   :  { %573 = vmatpush3.bf16.msra.mxu1 %v608_v41 }
  0x7c   :  { %574 = vmatprep.subr.bf16.mxu1 %v759_v0 }
  0x7d   :  { %555 = vmatpush3.bf16.msra.mxu0 %v601_v16 }
  0x7f   :  { %575 = vmatpush3.bf16.msra.mxu1 %v609_v42 }
 0x133   :  { %v156_v22 = vpop.f32.mrb[0].mxu0  ;;  %v206_v23 = vpop.f32.mrb[0].mxu1 }
 0x134   :  { %v532_v25 = vpop.f32.mrb[1].mxu0  ;;  %v207_v26 = vadd.f32 %v206_v23, %v156_v22  ;;  %v538_v27 = vpop.f32.mrb[1].mxu1 }
 0x135   :  { %v159_v28 = vpop.f32.mrb[2].mxu0  ;;  %v209_v29 = vpop.f32.mrb[2].mxu1 }
 0x136   :  { %v533_v30 = vpop.f32.mrb[3].mxu0  ;;  %v220_v31 = vadd.f32 %v487_v24, %v207_v26  ;;  %v210_v32 = vadd.f32 %v209_v29, %v159_v28  ;;  %v539_v33 = vpop.f32.mrb[3].mxu1 }
 0x138   :  { %v222_v34 = vmul.f32 0.01, %v220_v31  ;;  %v221_v35 = vadd.f32 %v487_v24, %v210_v32 }
 0x13a   :  { %v223_v36 = vmul.f32 0.01, %v221_v35  ;;  %v224_v37 = vmax.f32 %v220_v31, %v222_v34 }
 0x13c   :  { %v225_v38 = vmax.f32 %v221_v35, %v223_v36 }
 0x13e   :  { %v226_v39 = vpack.c.bf16 %v225_v38, %v224_v37 }
 0x140   :  { %557 = vmatmul.mubr.bf16.vlgmr.msra.gmra.mrb[4].mxu0 %v226_v39 }
 0x213   :  { %v332_v44 = vpop.f32.mrb[4].mxu0 }
 0x214   :  { %v333_v45 = vadd.f32 %v488_v43, %v332_v44  ;;  %v558_v46 = vpop.f32.mrb[5].mxu0 }
 0x215   :  { %v335_v47 = vpop.f32.mrb[6].mxu0 }
 0x216   :  { %v339_v48 = vmul.f32 0.01, %v333_v45  ;;  %v336_v49 = vadd.f32 %v488_v43, %v335_v47  ;;  %v559_v50 = vpop.f32.mrb[7].mxu0 }
 0x218   :  { %v341_v51 = vmax.f32 %v333_v45, %v339_v48  ;;  %v340_v52 = vmul.f32 0.01, %v336_v49 }
 0x21a   :  { %v342_v53 = vmax.f32 %v336_v49, %v340_v52  ;;  %v343_v54 = vadd.f32 %v341_v51, %v224_v37 }
 0x21c   :  { %v344_v55 = vadd.f32 %v342_v53, %v225_v38 }
 0x21e   :  { %v345_v56 = vpack.c.bf16 %v344_v55, %v343_v54 }
 0x220   :  { %577 = vmatmul.mubr.bf16.vlgmr.msra.gmra.mrb[4].mxu1 %v345_v56 }
 0x2f3   :  { %v451_v58 = vpop.f32.mrb[4].mxu1 }
 0x2f4   :  { %v452_v59 = vadd.f32 %v497_v57, %v451_v58  ;;  %v578_v60 = vpop.f32.mrb[5].mxu1 }
 0x2f5   :  { %v454_v61 = vpop.f32.mrb[6].mxu1 }
 0x2f6   :  { %v458_v62 = vmul.f32 0.01, %v452_v59  ;;  %v455_v63 = vadd.f32 %v497_v57, %v454_v61  ;;  %v579_v0 = vpop.f32.mrb[7].mxu1 }
 0x2f8   :  { %v460_v1 = vmax.f32 %v452_v59, %v458_v62  ;;  %v459_v2 = vmul.f32 0.01, %v455_v63 }
 0x2fa   :  { %462 = vst [vmem:[#allocation11] sm:$0xff] %v460_v1  ;;  %v461_v3 = vmax.f32 %v455_v63, %v459_v2 }
 0x2fc   :  { %463 = vst [vmem:[#allocation11 + $0x8] sm:$0xff] %v461_v3 }
 0x2fd   :  { %731 = shalt.err (!%p728_p2)
}
 0x2fe   :  { %s732_s18 = scalar_lea.hbm %s949_s9, 256 }
 0x2ff   :  { %p733_p3 = scmp.ne.s32.totalorder %s949_s9, %s732_s18  ;;  %p736_p4 = scmp.lt.u32.totalorder %s732_s18, %s949_s9 }
 0x301   :  { %p738_p5 = pnand %p736_p4, %p733_p3 }
 0x303   :  { %741 = shalt.err (!%p738_p5)
}
 0x304   :  { %475 = dma.vmem_to_hbm [thread:$0]  %s470_s15, 256, %s949_s9, [#allocation4], %s751_s19, %s751_s19, %s752_s20  }
 0x305   :  { %748 = dma.done.wait [#allocation4], 256  }
 0x306   :  { %749 = vsyncadd [#allocation4], 4294967040 }
 0x307   :  { %479 = vsyncpa [#allocation3], 1 }
 0x308   :  { %480 = vsyncpa [#allocation6], 1 }
 0x309   :  { %481 = vsyncpa [#allocation9], 1 }
 0x30a   :  { %482 = vsyncpa [#allocation4], 1 }

// kernel: tpu_custom_call.1
= control target key start
LH: loop header
LB: loop body
LE: loop exit
PB: predicated region body
PF: predicated region fallthrough
CT: control target
= control target key end

     0   :  { %14 = vsyncpa [#allocation3], 0  ;;  %s940_s0 = inlined_call_operand.hbm [shape: f32[16,16], index: 0, kind: input, shape index: {}]   ;;  %s941_s1 = inlined_call_operand.hbm [shape: f32[16,16], index: 1, kind: input, shape index: {}]   ;;  %s942_s2 = inlined_call_operand.hbm [shape: bf16[16,128], index: 2, kind: input, shape index: {}]   ;;  %s943_s3 = inlined_call_operand.vmem [shape: bf16[16,128], index: 3, kind: input, shape index: {}]   ;;  %s944_s4 = inlined_call_operand.vmem [shape: f32[1,128], index: 4, kind: input, shape index: {}]   ;;  %s945_s5 = inlined_call_operand.hbm [shape: bf16[128,128], index: 5, kind: input, shape index: {}]   ;;  %s946_s6 = inlined_call_operand.vmem [shape: f32[1,128], index: 6, kind: input, shape index: {}]   ;;  %s947_s7 = inlined_call_operand.hbm [shape: bf16[128,128], index: 7, kind: input, shape index: {}]   ;;  %s948_s8 = inlined_call_operand.vmem [shape: f32[1,128], index: 8, kind: input, shape index: {}]   ;;  %s949_s9 = inlined_call_operand.hbm [shape: f32[16,128], index: 9, kind: output, shape index: {}]  }
   0x1   :  { %15 = vsyncpa [#allocation6], 0 }
   0x2   :  { %16 = vsyncpa [#allocation9], 0 }
   0x3   :  { %17 = vsyncpa [#allocation4], 0  ;;  %s750_s30 = smov [#allocation5]   ;;  %s610_s13 = scalar_lea.hbm %s941_s1, 256 }
   0x4   :  { %s35_s10 = sshll.u32 %s750_s30, 4  ;;  %p611_p0 = scmp.ne.s32.totalorder %s941_s1, %s610_s13  ;;  %s36_s10 = int_to_ptr.vmem [resolvable:$true] %s35_s10 }
   0x5   :  { %p614_p1 = scmp.lt.u32.totalorder %s610_s13, %s941_s1 }
   0x7   :  { %p616_p2 = pnand %p614_p1, %p611_p0 }
   0x9   :  { %619 = shalt.err (!%p616_p2)
}
   0xa   :  { %s620_s18 = scalar_lea.vmem %s36_s10, 256  ;;  %p625_p4 = scmp.lt.s32.totalorder %s36_s10, %s36_s10 }
   0xb   :  { %p621_p3 = scmp.ne.s32.totalorder %s36_s10, %s620_s18  ;;  %p626_p5 = scmp.lt.s32.totalorder %s620_s18, %s620_s18 }
   0xd   :  { %p627_p6 = por %p626_p5, %p625_p4 }
   0xf   :  { %p628_p7 = pnand %p627_p6, %p621_p3 }
  0x11   :  { %631 = shalt.err (!%p628_p7)
}
  0x12   :  { %s751_s19 = smov 128   ;;  %s752_s20 = smov 8  }
  0x13   :  { %41 = dma.hbm_to_vmem [thread:$0]  %s941_s1, 256, %s36_s10, [#allocation6], %s751_s19, %s751_s19, %s752_s20  }
  0x14   :  { %s753_s23 = smov [#allocation8]   ;;  %s754_s25 = smov [#allocation2]  }
  0x15   :  { %s63_s24 = sshll.u32 %s753_s23, 4  ;;  %s23_s26 = sshll.u32 %s754_s25, 4  ;;  %s64_s24 = int_to_ptr.vmem [resolvable:$true] %s63_s24  ;;  %s24_s26 = int_to_ptr.vmem [resolvable:$true] %s23_s26 }
  0x16   :  { %s632_s29 = scalar_lea.hbm %s945_s5, 1024 }
  0x17   :  { %p633_p8 = scmp.ne.s32.totalorder %s945_s5, %s632_s29  ;;  %p636_p9 = scmp.lt.u32.totalorder %s632_s29, %s945_s5 }
  0x19   :  { %p638_p10 = pnand %p636_p9, %p633_p8 }
  0x1b   :  { %641 = shalt.err (!%p638_p10)
}
  0x1c   :  { %s642_s1 = scalar_lea.vmem %s64_s24, 1024  ;;  %p647_p12 = scmp.lt.s32.totalorder %s64_s24, %s64_s24 }
  0x1d   :  { %p643_p11 = scmp.ne.s32.totalorder %s64_s24, %s642_s1  ;;  %p648_p13 = scmp.lt.s32.totalorder %s642_s1, %s642_s1 }
  0x1f   :  { %p649_p0 = por %p648_p13, %p647_p12 }
  0x21   :  { %p650_p1 = pnand %p649_p0, %p643_p11 }
  0x23   :  { %653 = shalt.err (!%p650_p1)
}
  0x24   :  { %s755_s10 = smov 64   ;;  %s756_s14 = smov 4  }
  0x25   :  { %69 = dma.hbm_to_vmem [thread:$0]  %s945_s5, 1024, %s64_s24, [#allocation9], %s755_s10, %s755_s10, %s756_s14  }
  0x26   :  { %s654_s21 = scalar_lea.hbm %s940_s0, 256 }
  0x27   :  { %p655_p2 = scmp.ne.s32.totalorder %s940_s0, %s654_s21  ;;  %p658_p3 = scmp.lt.u32.totalorder %s654_s21, %s940_s0 }
  0x29   :  { %p660_p4 = pnand %p658_p3, %p655_p2 }
  0x2b   :  { %663 = shalt.err (!%p660_p4)
}
  0x2c   :  { %s664_s28 = scalar_lea.vmem %s24_s26, 256  ;;  %p669_p6 = scmp.lt.s32.totalorder %s24_s26, %s24_s26 }
  0x2d   :  { %p665_p5 = scmp.ne.s32.totalorder %s24_s26, %s664_s28  ;;  %p670_p7 = scmp.lt.s32.totalorder %s664_s28, %s664_s28 }
  0x2f   :  { %p671_p8 = por %p670_p7, %p669_p6 }
  0x31   :  { %p672_p9 = pnand %p671_p8, %p665_p5 }
  0x33   :  { %675 = shalt.err (!%p672_p9)
}
  0x34   :  { %29 = dma.hbm_to_vmem [thread:$0]  %s940_s0, 256, %s24_s26, [#allocation3], %s751_s19, %s751_s19, %s752_s20  }
  0x35   :  { %s757_s29 = smov [#allocation7]   ;;  %s758_s11 = smov [#allocation10]  }
  0x36   :  { %s47_s30 = sshll.u32 %s757_s29, 4  ;;  %s77_s12 = sshll.u32 %s758_s11, 4  ;;  %s48_s30 = int_to_ptr.vmem [resolvable:$true] %s47_s30  ;;  %s78_s12 = int_to_ptr.vmem [resolvable:$true] %s77_s12 }
  0x37   :  { %s676_s15 = scalar_lea.hbm %s942_s2, 128 }
  0x38   :  { %p677_p10 = scmp.ne.s32.totalorder %s942_s2, %s676_s15  ;;  %p680_p11 = scmp.lt.u32.totalorder %s676_s15, %s942_s2 }
  0x3a   :  { %p682_p12 = pnand %p680_p11, %p677_p10 }
  0x3c   :  { %685 = shalt.err (!%p682_p12)
}
  0x3d   :  { %s686_s0 = scalar_lea.vmem %s48_s30, 128  ;;  %p691_p0 = scmp.lt.s32.totalorder %s48_s30, %s48_s30 }
  0x3e   :  { %p687_p13 = scmp.ne.s32.totalorder %s48_s30, %s686_s0  ;;  %p692_p1 = scmp.lt.s32.totalorder %s686_s0, %s686_s0 }
  0x40   :  { %p693_p2 = por %p692_p1, %p691_p0 }
  0x42   :  { %p694_p3 = pnand %p693_p2, %p687_p13 }
  0x44   :  { %697 = shalt.err (!%p694_p3)
}
  0x45   :  { %53 = dma.hbm_to_vmem [thread:$0]  %s942_s2, 128, %s48_s30, [#allocation6], %s755_s10, %s755_s10, %s756_s14  }
  0x46   :  { %s698_s27 = scalar_lea.hbm %s947_s7, 1024 }
  0x47   :  { %p699_p4 = scmp.ne.s32.totalorder %s947_s7, %s698_s27  ;;  %p702_p5 = scmp.lt.u32.totalorder %s698_s27, %s947_s7 }
  0x49   :  { %p704_p6 = pnand %p702_p5, %p699_p4 }
  0x4b   :  { %707 = shalt.err (!%p704_p6)
}
  0x4c   :  { %s708_s11 = scalar_lea.vmem %s78_s12, 1024  ;;  %p713_p8 = scmp.lt.s32.totalorder %s78_s12, %s78_s12 }
  0x4d   :  { %p709_p7 = scmp.ne.s32.totalorder %s78_s12, %s708_s11  ;;  %p714_p9 = scmp.lt.s32.totalorder %s708_s11, %s708_s11 }
  0x4f   :  { %p715_p10 = por %p714_p9, %p713_p8 }
  0x51   :  { %p716_p11 = pnand %p715_p10, %p709_p7 }
  0x53   :  { %719 = shalt.err (!%p716_p11)
}
  0x54   :  { %83 = dma.hbm_to_vmem [thread:$0]  %s947_s7, 1024, %s78_s12, [#allocation9], %s755_s10, %s755_s10, %s756_s14  }
  0x55   :  { %742 = dma.done.wait [#allocation3], 256  }
  0x56   :  { %743 = vsyncadd [#allocation3], 4294967040 }
  0x57   :  { %744 = dma.done.wait [#allocation6], 384  }
  0x58   :  { %745 = vsyncadd [#allocation6], 4294966912 }
  0x59   :  { %746 = dma.done.wait [#allocation9], 2048  }
  0x5a   :  { %747 = vsyncadd [#allocation9], 4294965248  ;;  %v759_v0 = vmov 0.0   ;;  %vm760_vm0 = vmmov 0   ;;  %v592_v1 = vld [vmem:[%s943_s3] sm:$0xff]   ;;  %v105_v3 = vld [vmem:[#allocation5] sm:$0xff] }
  0x5b   :  { %528 = vmatprep.subr.bf16.mxu0 %v759_v0  ;;  %534 = vmatprep.subr.bf16.mxu1 %v759_v0  ;;  %v593_v2 = vld [vmem:[#allocation7] sm:$0xff]   ;;  %v106_v4 = vld [vmem:[#allocation5 + $0x8] sm:$0xff]  ;;  %vm118_vm1 = vcmask 130048   ;;  %v103_v7 = vld [vmem:[#allocation2 + $0x8] sm:$0xff] }
  0x5c   :  { %530 = vmatprep.mubr.msk.bf16.mxu0 %vm760_vm0, %v759_v0  ;;  %536 = vmatprep.mubr.msk.bf16.mxu1 %vm760_vm0, %v759_v0  ;;  %v102_v5 = vld [vmem:[#allocation2] sm:$0xff]  ;;  %v107_v6 = vpack.c.bf16 %v106_v4, %v105_v3  ;;  %v594_v9 = vld [vmem:[#allocation8] sm:$0xff]   ;;  %v595_v10 = vld [vmem:[#allocation8 + $0x8] sm:$0xff]  }
  0x5d   :  { %529 = vmatpush3.bf16.msra.mxu0 %v592_v1  ;;  %535 = vmatpush3.bf16.msra.mxu1 %v593_v2  ;;  %v104_v8 = vpack.c.bf16 %v103_v7, %v102_v5  ;;  %v596_v11 = vld [vmem:[#allocation8 + $0x10] sm:$0xff]   ;;  %v597_v12 = vld [vmem:[#allocation8 + $0x18] sm:$0xff]   ;;  %v598_v13 = vld [vmem:[#allocation8 + $0x20] sm:$0xff]  }
  0x5e   :  { %540 = vmatprep.subr.bf16.mxu0 %v759_v0  ;;  %560 = vmatprep.subr.bf16.mxu1 %v759_v0  ;;  %v599_v14 = vld [vmem:[#allocation8 + $0x28] sm:$0xff]   ;;  %v600_v15 = vld [vmem:[#allocation8 + $0x30] sm:$0xff]   ;;  %v601_v16 = vld [vmem:[#allocation8 + $0x38] sm:$0xff]  }
  0x5f   :  { %v602_v17 = vld [vmem:[#allocation10] sm:$0xff]   ;;  %v603_v18 = vld [vmem:[#allocation10 + $0x8] sm:$0xff]   ;;  %v604_v19 = vld [vmem:[#allocation10 + $0x10] sm:$0xff]  }
  0x60   :  { %531 = vmatmul.mubr.msk.bf16.vlgmr.msra.gmra.mrb[0].mxu0 %vm118_vm1, %v107_v6  ;;  %537 = vmatmul.mubr.msk.bf16.vlgmr.msra.gmra.mrb[0].mxu1 %vm118_vm1, %v104_v8  ;;  %v605_v20 = vld [vmem:[#allocation10 + $0x18] sm:$0xff]   ;;  %v606_v21 = vld [vmem:[#allocation10 + $0x20] sm:$0xff]   ;;  %v607_v40 = vld [vmem:[#allocation10 + $0x28] sm:$0xff]  }
  0x61   :  { %541 = vmatpush3.bf16.msra.mxu0 %v594_v9  ;;  %556 = vmatprep.mubr.msk.bf16.mxu0 %vm760_vm0, %v759_v0  ;;  %v487_v24 = vld [vmem:[%s944_s4] ss:$0 sm:$0xff]  ;;  %v608_v41 = vld [vmem:[#allocation10 + $0x30] sm:$0xff]  }
  0x62   :  { %542 = vmatprep.subr.bf16.mxu0 %v759_v0  ;;  %576 = vmatprep.mubr.msk.bf16.mxu1 %vm760_vm0, %v759_v0  ;;  %v609_v42 = vld [vmem:[#allocation10 + $0x38] sm:$0xff]  }
  0x63   :  { %561 = vmatpush3.bf16.msra.mxu1 %v602_v17  ;;  %v488_v43 = vld [vmem:[%s946_s6] ss:$0 sm:$0xff]  ;;  %s761_s6 = smov [#allocation11]  }
  0x64   :  { %562 = vmatprep.subr.bf16.mxu1 %v759_v0  ;;  %v497_v57 = vld [vmem:[%s948_s8] ss:$0 sm:$0xff]  ;;  %s469_s15 = sshll.u32 %s761_s6, 4  ;;  %s470_s15 = int_to_ptr.vmem [resolvable:$true] %s469_s15 }
  0x65   :  { %543 = vmatpush3.bf16.msra.mxu0 %v595_v10  ;;  %s720_s16 = scalar_lea.vmem %s470_s15, 256  ;;  %p725_p13 = scmp.lt.s32.totalorder %s470_s15, %s470_s15 }
  0x66   :  { %544 = vmatprep.subr.bf16.mxu0 %v759_v0  ;;  %p721_p12 = scmp.ne.s32.totalorder %s470_s15, %s720_s16  ;;  %p726_p0 = scmp.lt.s32.totalorder %s720_s16, %s720_s16 }
  0x67   :  { %563 = vmatpush3.bf16.msra.mxu1 %v603_v18 }
  0x68   :  { %564 = vmatprep.subr.bf16.mxu1 %v759_v0  ;;  %p727_p1 = por %p726_p0, %p725_p13 }
  0x69   :  { %545 = vmatpush3.bf16.msra.mxu0 %v596_v11 }
  0x6a   :  { %546 = vmatprep.subr.bf16.mxu0 %v759_v0  ;;  %p728_p2 = pnand %p727_p1, %p721_p12 }
  0x6b   :  { %565 = vmatpush3.bf16.msra.mxu1 %v604_v19 }
  0x6c   :  { %566 = vmatprep.subr.bf16.mxu1 %v759_v0 }
  0x6d   :  { %547 = vmatpush3.bf16.msra.mxu0 %v597_v12 }
  0x6e   :  { %548 = vmatprep.subr.bf16.mxu0 %v759_v0 }
  0x6f   :  { %567 = vmatpush3.bf16.msra.mxu1 %v605_v20 }
  0x70   :  { %568 = vmatprep.subr.bf16.mxu1 %v759_v0 }
  0x71   :  { %549 = vmatpush3.bf16.msra.mxu0 %v598_v13 }
  0x72   :  { %550 = vmatprep.subr.bf16.mxu0 %v759_v0 }
  0x73   :  { %569 = vmatpush3.bf16.msra.mxu1 %v606_v21 }
  0x74   :  { %570 = vmatprep.subr.bf16.mxu1 %v759_v0 }
  0x75   :  { %551 = vmatpush3.bf16.msra.mxu0 %v599_v14 }
  0x76   :  { %552 = vmatprep.subr.bf16.mxu0 %v759_v0 }
  0x77   :  { %571 = vmatpush3.bf16.msra.mxu1 %v607_v40 }
  0x78   :  { %572 = vmatprep.subr.bf16.mxu1 %v759_v0 }
  0x79   :  { %553 = vmatpush3.bf16.msra.mxu0 %v600_v15 }
  0x7a   :  { %554 = vmatprep.subr.bf16.mxu0 %v759_v0 }
  0x7b   :  { %573 = vmatpush3.bf16.msra.mxu1 %v608_v41 }
  0x7c   :  { %574 = vmatprep.subr.bf16.mxu1 %v759_v0 }
  0x7d   :  { %555 = vmatpush3.bf16.msra.mxu0 %v601_v16 }
  0x7f   :  { %575 = vmatpush3.bf16.msra.mxu1 %v609_v42 }
 0x133   :  { %v156_v22 = vpop.f32.mrb[0].mxu0  ;;  %v206_v23 = vpop.f32.mrb[0].mxu1 }
 0x134   :  { %v532_v25 = vpop.f32.mrb[1].mxu0  ;;  %v207_v26 = vadd.f32 %v206_v23, %v156_v22  ;;  %v538_v27 = vpop.f32.mrb[1].mxu1 }
 0x135   :  { %v159_v28 = vpop.f32.mrb[2].mxu0  ;;  %v209_v29 = vpop.f32.mrb[2].mxu1 }
 0x136   :  { %v533_v30 = vpop.f32.mrb[3].mxu0  ;;  %v220_v31 = vadd.f32 %v487_v24, %v207_v26  ;;  %v210_v32 = vadd.f32 %v209_v29, %v159_v28  ;;  %v539_v33 = vpop.f32.mrb[3].mxu1 }
 0x138   :  { %v222_v34 = vmul.f32 0.01, %v220_v31  ;;  %v221_v35 = vadd.f32 %v487_v24, %v210_v32 }
 0x13a   :  { %v223_v36 = vmul.f32 0.01, %v221_v35  ;;  %v224_v37 = vmax.f32 %v220_v31, %v222_v34 }
 0x13c   :  { %v225_v38 = vmax.f32 %v221_v35, %v223_v36 }
 0x13e   :  { %v226_v39 = vpack.c.bf16 %v225_v38, %v224_v37 }
 0x140   :  { %557 = vmatmul.mubr.bf16.vlgmr.msra.gmra.mrb[4].mxu0 %v226_v39 }
 0x213   :  { %v332_v44 = vpop.f32.mrb[4].mxu0 }
 0x214   :  { %v333_v45 = vadd.f32 %v488_v43, %v332_v44  ;;  %v558_v46 = vpop.f32.mrb[5].mxu0 }
 0x215   :  { %v335_v47 = vpop.f32.mrb[6].mxu0 }
 0x216   :  { %v339_v48 = vmul.f32 0.01, %v333_v45  ;;  %v336_v49 = vadd.f32 %v488_v43, %v335_v47  ;;  %v559_v50 = vpop.f32.mrb[7].mxu0 }
 0x218   :  { %v341_v51 = vmax.f32 %v333_v45, %v339_v48  ;;  %v340_v52 = vmul.f32 0.01, %v336_v49 }
 0x21a   :  { %v342_v53 = vmax.f32 %v336_v49, %v340_v52  ;;  %v343_v54 = vadd.f32 %v341_v51, %v224_v37 }
 0x21c   :  { %v344_v55 = vadd.f32 %v342_v53, %v225_v38 }
 0x21e   :  { %v345_v56 = vpack.c.bf16 %v344_v55, %v343_v54 }
 0x220   :  { %577 = vmatmul.mubr.bf16.vlgmr.msra.gmra.mrb[4].mxu1 %v345_v56 }
 0x2f3   :  { %v451_v58 = vpop.f32.mrb[4].mxu1 }
 0x2f4   :  { %v452_v59 = vadd.f32 %v497_v57, %v451_v58  ;;  %v578_v60 = vpop.f32.mrb[5].mxu1 }
 0x2f5   :  { %v454_v61 = vpop.f32.mrb[6].mxu1 }
 0x2f6   :  { %v458_v62 = vmul.f32 0.01, %v452_v59  ;;  %v455_v63 = vadd.f32 %v497_v57, %v454_v61  ;;  %v579_v0 = vpop.f32.mrb[7].mxu1 }
 0x2f8   :  { %v460_v1 = vmax.f32 %v452_v59, %v458_v62  ;;  %v459_v2 = vmul.f32 0.01, %v455_v63 }
 0x2fa   :  { %462 = vst [vmem:[#allocation11] sm:$0xff] %v460_v1  ;;  %v461_v3 = vmax.f32 %v455_v63, %v459_v2 }
 0x2fc   :  { %463 = vst [vmem:[#allocation11 + $0x8] sm:$0xff] %v461_v3 }
 0x2fd   :  { %731 = shalt.err (!%p728_p2)
}
 0x2fe   :  { %s732_s18 = scalar_lea.hbm %s949_s9, 256 }
 0x2ff   :  { %p733_p3 = scmp.ne.s32.totalorder %s949_s9, %s732_s18  ;;  %p736_p4 = scmp.lt.u32.totalorder %s732_s18, %s949_s9 }
 0x301   :  { %p738_p5 = pnand %p736_p4, %p733_p3 }
 0x303   :  { %741 = shalt.err (!%p738_p5)
}
 0x304   :  { %475 = dma.vmem_to_hbm [thread:$0]  %s470_s15, 256, %s949_s9, [#allocation4], %s751_s19, %s751_s19, %s752_s20  }
 0x305   :  { %748 = dma.done.wait [#allocation4], 256  }
 0x306   :  { %749 = vsyncadd [#allocation4], 4294967040 }
 0x307   :  { %479 = vsyncpa [#allocation3], 1 }
 0x308   :  { %480 = vsyncpa [#allocation6], 1 }
 0x309   :  { %481 = vsyncpa [#allocation9], 1 }
 0x30a   :  { %482 = vsyncpa [#allocation4], 1 }

</bundles_post_ra>
